<compile_context>
chip_gen: v7x
topology: tpu7x:2x2x1
jax: 0.10.0
libtpu: 0.0.40
codegen_flags: <defaults>
</compile_context>

<pallas_src>
import functools

import jax
import jax.numpy as jnp
from jax.experimental import pallas as pl
from jax.experimental.pallas import tpu as pltpu


_INV_SQRT2 = 0.7071067811865476
_LN_EPS = 1e-12

# Abramowitz & Stegun 7.1.26 erf coefficients (|err| < 1.5e-7 on erf itself).
_A1, _A2, _A3, _A4, _A5 = 0.254829592, -0.284496736, 1.421413741, -1.453152027, 1.061405429
_P = 0.3275911


def _round_up(x, m):
    return ((x + m - 1) // m) * m


def _default_epilogue_dtype(hidden_size):
    """bf16 GELU epilogue only where it pays off: bf16-capable VPU/EUP (v6e/v7x) and
    production-sized hidden dims where the epilogue is the binding slot.  v5e/v4
    (no bf16 VPU/EUP) and small H keep the f32 epilogue."""
    if hidden_size < 512:
        return jnp.float32
    try:
        kind = jax.devices()[0].device_kind.lower()
    except Exception:
        return jnp.float32
    if any(tag in kind for tag in ("v2", "v3", "v4", "v5")):
        return jnp.float32
    return jnp.bfloat16


def transform_kernel(x_ref, w_ref, p_ref, o_ref, *, mxu_dtype, gelu_dtype):
    # ---- Dense: (tm, H) @ (H, H) on the MXU, f32 accumulation. ----
    x = x_ref[...]
    if x.dtype != mxu_dtype:
        # In-kernel cast (hides under MXU/epilogue) instead of an extra HBM pass
        # from a wrapper-side astype.
        x = x.astype(mxu_dtype)
    y = jnp.dot(x, w_ref[...], preferred_element_type=jnp.float32)
    y = y + p_ref[0:1, :]                                  # bias (f32, broadcast over rows)

    # ---- GELU, erf form (module semantics):
    #   gelu(y) = 0.5*y*(1 + erf(y/sqrt2)) = 0.5*y + 0.5*|y|*erf(|y|/sqrt2)
    # erf is odd -> evaluate the polynomial on |y| only: no sign/select dance.
    ay = jnp.abs(y)
    z = ay * _INV_SQRT2
    # 1/(1+p*z) on the (otherwise idle) EUP slot instead of a VALU Newton divide.
    t = pl.reciprocal(1.0 + _P * z, approx=True)
    if gelu_dtype != jnp.float32:
        # bf16 polynomial/exp on v6e/v7x: ~2x throughput on the binding VALU slot.
        t = t.astype(gelu_dtype)
        z = z.astype(gelu_dtype)
    poly = ((((_A5 * t + _A4) * t + _A3) * t + _A2) * t + _A1) * t
    erf_pos = 1.0 - poly * jnp.exp(-z * z)                 # exp on the EUP
    g = 0.5 * (y + ay * erf_pos.astype(jnp.float32))       # final multiply in f32

    # ---- LayerNorm over the feature axis, eps = 1e-12 (f32 statistics). ----
    # Two-pass centered variance kept (cancellation-safe; XLU not the bottleneck).
    mean = jnp.mean(g, axis=-1, keepdims=True)
    c = g - mean
    var = jnp.mean(c * c, axis=-1, keepdims=True)
    g = c * jax.lax.rsqrt(var + _LN_EPS)
    g = g * p_ref[1:2, :] + p_ref[2:3, :]                  # gamma, beta

    o_ref[...] = g.astype(o_ref.dtype)


def bert_prediction_head_transform(hidden_states, w, b, gamma, beta, *,
                                   tm=512, mxu_dtype=jnp.bfloat16,
                                   gelu_dtype=None, out_dtype=None):
    """hidden_states: [..., H]; w: [H, H] (in->out layout); b/gamma/beta: [H]."""
    H = w.shape[1]
    assert w.shape[0] == hidden_states.shape[-1] == H
    lead_shape = hidden_states.shape[:-1]

    if gelu_dtype is None:
        gelu_dtype = _default_epilogue_dtype(H)
    if out_dtype is None:
        # On v5e (lowest HBM BW, single vst slot) pass out_dtype=jnp.bfloat16 if the
        # consumer tolerates it to halve writeback traffic.
        out_dtype = hidden_states.dtype

    # Flatten to a token-major 2D slab [T, H].  No padding / no wrapper cast:
    # ragged tails are handled by the cdiv grid (boundary blocks), activations
    # stream in their native dtype and are cast inside the kernel.
    x2 = hidden_states.reshape(-1, H)
    T = x2.shape[0]

    # Row tile: large default (512) amortizes the ~0.35us per-grid-step overhead and
    # gives near-roofline DMAs; multiple of 16 covers both f32 and bf16 sublane minima.
    tm = _round_up(tm, 16)
    tm_eff = min(tm, _round_up(T, 16))
    # Keep >= 2 row tiles whenever T allows so the "parallel" grid axis feeds both
    # TensorCores on v7x (a single tile would idle one core).
    two_tile = _round_up(pl.cdiv(T, 2), 16)
    if 16 <= two_tile < tm_eff:
        tm_eff = two_tile
    grid = (pl.cdiv(T, tm_eff),)

    # Weight streamed in bf16 (one-time wrapper cast: it is grid-invariant and tiny,
    # ~1.2 MiB at H=768; an in-kernel cast would burn VALU every grid step).
    w_in = w.astype(mxu_dtype)
    # bias / gamma / beta packed into one (3, H) f32 block -> single small DMA.
    params = jnp.stack([b, gamma, beta], axis=0).astype(jnp.float32)

    kernel = functools.partial(transform_kernel,
                               mxu_dtype=mxu_dtype, gelu_dtype=gelu_dtype)

    out = pl.pallas_call(
        kernel,
        out_shape=jax.ShapeDtypeStruct((T, H), out_dtype),
        grid_spec=pltpu.PrefetchScalarGridSpec(
            num_scalar_prefetch=0,
            grid=grid,
            in_specs=[
                pl.BlockSpec((tm_eff, H), lambda i: (i, 0)),   # activation row tile
                # Grid-invariant operands (constant index_map): Mosaic DMAs them once.
                # pl.Buffered(1) would only trim the spare copy (~1-2 MiB at BERT sizes);
                # left at the default for maximum compatibility.
                pl.BlockSpec((H, H), lambda i: (0, 0)),        # dense weight
                pl.BlockSpec((3, H), lambda i: (0, 0)),        # packed bias/gamma/beta
            ],
            out_specs=pl.BlockSpec((tm_eff, H), lambda i: (i, 0)),
        ),
        compiler_params=pltpu.CompilerParams(
            dimension_semantics=("parallel",),      # row tiles shard across TCs
            vmem_limit_bytes=48 * 1024 * 1024,      # explicit budget; safe on 64 MiB v7x
        ),
    )(x2, w_in, params)

    return out.reshape(lead_shape + (H,))


def reference(hidden_states, w, b, gamma, beta):
    x = hidden_states.astype(jnp.float32) @ w.astype(jnp.float32) + b
    x = jax.nn.gelu(x, approximate=False)          # erf-based gelu (module semantics)
    mean = jnp.mean(x, axis=-1, keepdims=True)
    var = jnp.mean((x - mean) ** 2, axis=-1, keepdims=True)
    return (x - mean) * jax.lax.rsqrt(var + _LN_EPS) * gamma + beta


if __name__ == "__main__":
    # Small, module-consistent shapes: batch=2, seq=8, hidden=128
    # (hidden is a multiple of 128 so the output stays lane-dense).
    batch, seq, hidden_size = 2, 8, 128

    key = jax.random.PRNGKey(0)
    k1, k2, k3 = jax.random.split(key, 3)

    hidden_states = jax.random.normal(k1, (batch, seq, hidden_size), dtype=jnp.float32)

    # Deterministic parameter init (nn.Linear-style scale; LN gamma=1, beta=0).
    w = jax.random.normal(k2, (hidden_size, hidden_size), dtype=jnp.float32) * (
        1.0 / jnp.sqrt(hidden_size)
    )
    b = jax.random.normal(k3, (hidden_size,), dtype=jnp.float32) * 0.02
    gamma = jnp.ones((hidden_size,), dtype=jnp.float32)
    beta = jnp.zeros((hidden_size,), dtype=jnp.float32)

    out = bert_prediction_head_transform(hidden_states, w, b, gamma, beta)
    out = jax.block_until_ready(out)

    ref = reference(hidden_states, w, b, gamma, beta)
    assert out.shape == hidden_states.shape
    # Tolerance accounts for bf16 streaming operands (f32 accumulation in-kernel).
    assert jnp.allclose(out, ref, atol=3e-2, rtol=3e-2), (
        "mismatch vs reference; max abs err = "
        f"{float(jnp.max(jnp.abs(out - ref)))}"
    )

    print("KERNEL_OK")
</pallas_src>

<mosaic_0001>
module attributes {stable_mosaic.version = 11 : i64} {
  func.func @transform_kernel(%arg0: i32, %arg1: memref<16x128xf32, #tpu.memory_space<vmem>>, %arg2: memref<128x128xbf16, #tpu.memory_space<vmem>>, %arg3: memref<3x128xf32, #tpu.memory_space<vmem>>, %arg4: memref<16x128xf32, #tpu.memory_space<vmem>>) attributes {dimension_semantics = [#tpu.dimension_semantics<parallel>], iteration_bounds = array<i64: 1>, scalar_prefetch = 0 : i64, scratch_operands = 0 : i64, tpu.core_type = #tpu.core_type<tc>, window_params = [{transform_indices = @transform_0, window_bounds = array<i64: 16, 128>}, {pipeline_mode = #tpu.pipeline_mode<synchronous>, transform_indices = @transform_1, window_bounds = array<i64: 128, 128>}, {pipeline_mode = #tpu.pipeline_mode<synchronous>, transform_indices = @transform_2, window_bounds = array<i64: 3, 128>}, {transform_indices = @transform_3, window_bounds = array<i64: 16, 128>}]} {
    %c0 = arith.constant 0 : index
    %c0_0 = arith.constant 0 : index
    %0 = vector.load %arg1[%c0, %c0_0] : memref<16x128xf32, #tpu.memory_space<vmem>>, vector<16x128xf32>
    %1 = arith.truncf %0 : vector<16x128xf32> to vector<16x128xbf16>
    %c0_1 = arith.constant 0 : index
    %c0_2 = arith.constant 0 : index
    %2 = vector.load %arg2[%c0_1, %c0_2] : memref<128x128xbf16, #tpu.memory_space<vmem>>, vector<128x128xbf16>
    %cst = arith.constant dense<0.000000e+00> : vector<16x128xf32>
    %3 = tpu.matmul %1, %2, %cst {dimension_numbers = #tpu.dot_dimension_numbers<[1], [0], [0], [1], [0, 0, 1, 1], [], []>} : vector<16x128xbf16>, vector<128x128xbf16>, vector<16x128xf32> -> vector<16x128xf32>
    %c0_3 = arith.constant 0 : index
    %c0_4 = arith.constant 0 : index
    %4 = vector.load %arg3[%c0_3, %c0_4] : memref<3x128xf32, #tpu.memory_space<vmem>>, vector<1x128xf32>
    %5 = vector.broadcast %4 : vector<1x128xf32> to vector<16x128xf32>
    %6 = arith.addf %3, %5 : vector<16x128xf32>
    %7 = math.absf %6 : vector<16x128xf32>
    %cst_5 = arith.constant 0.707106769 : f32
    %8 = vector.broadcast %cst_5 : f32 to vector<16x128xf32>
    %9 = arith.mulf %7, %8 : vector<16x128xf32>
    %cst_6 = arith.constant 0.327591091 : f32
    %10 = vector.broadcast %cst_6 : f32 to vector<16x128xf32>
    %11 = arith.mulf %10, %9 : vector<16x128xf32>
    %cst_7 = arith.constant 1.000000e+00 : f32
    %12 = vector.broadcast %cst_7 : f32 to vector<16x128xf32>
    %13 = arith.addf %12, %11 : vector<16x128xf32>
    %14 = tpu.reciprocal %13 {approx = true} : vector<16x128xf32> -> vector<16x128xf32>
    %cst_8 = arith.constant 1.06140542 : f32
    %15 = vector.broadcast %cst_8 : f32 to vector<16x128xf32>
    %16 = arith.mulf %15, %14 : vector<16x128xf32>
    %cst_9 = arith.constant -1.45315206 : f32
    %17 = vector.broadcast %cst_9 : f32 to vector<16x128xf32>
    %18 = arith.addf %16, %17 : vector<16x128xf32>
    %19 = arith.mulf %18, %14 : vector<16x128xf32>
    %cst_10 = arith.constant 1.42141378 : f32
    %20 = vector.broadcast %cst_10 : f32 to vector<16x128xf32>
    %21 = arith.addf %19, %20 : vector<16x128xf32>
    %22 = arith.mulf %21, %14 : vector<16x128xf32>
    %cst_11 = arith.constant -0.284496725 : f32
    %23 = vector.broadcast %cst_11 : f32 to vector<16x128xf32>
    %24 = arith.addf %22, %23 : vector<16x128xf32>
    %25 = arith.mulf %24, %14 : vector<16x128xf32>
    %cst_12 = arith.constant 0.254829586 : f32
    %26 = vector.broadcast %cst_12 : f32 to vector<16x128xf32>
    %27 = arith.addf %25, %26 : vector<16x128xf32>
    %28 = arith.mulf %27, %14 : vector<16x128xf32>
    %cst_13 = arith.constant 0.000000e+00 : f32
    %29 = vector.broadcast %cst_13 : f32 to vector<16x128xf32>
    %30 = arith.subf %29, %9 : vector<16x128xf32>
    %31 = arith.mulf %30, %9 : vector<16x128xf32>
    %32 = math.exp %31 : vector<16x128xf32>
    %33 = arith.mulf %28, %32 : vector<16x128xf32>
    %cst_14 = arith.constant 1.000000e+00 : f32
    %34 = vector.broadcast %cst_14 : f32 to vector<16x128xf32>
    %35 = arith.subf %34, %33 : vector<16x128xf32>
    %36 = arith.mulf %7, %35 : vector<16x128xf32>
    %37 = arith.addf %6, %36 : vector<16x128xf32>
    %cst_15 = arith.constant 5.000000e-01 : f32
    %38 = vector.broadcast %cst_15 : f32 to vector<16x128xf32>
    %39 = arith.mulf %38, %37 : vector<16x128xf32>
    %cst_16 = arith.constant dense<0.000000e+00> : vector<16xf32>
    %40 = vector.multi_reduction <add>, %39, %cst_16 [1] : vector<16x128xf32> to vector<16xf32>
    %41 = vector.shape_cast %40 : vector<16xf32> to vector<16x1xf32>
    %cst_17 = arith.constant 1.280000e+02 : f32
    %42 = vector.broadcast %cst_17 : f32 to vector<16x1xf32>
    %43 = arith.divf %41, %42 : vector<16x1xf32>
    %44 = vector.broadcast %43 : vector<16x1xf32> to vector<16x128xf32>
    %45 = arith.subf %39, %44 : vector<16x128xf32>
    %46 = arith.mulf %45, %45 : vector<16x128xf32>
    %cst_18 = arith.constant dense<0.000000e+00> : vector<16xf32>
    %47 = vector.multi_reduction <add>, %46, %cst_18 [1] : vector<16x128xf32> to vector<16xf32>
    %48 = vector.shape_cast %47 : vector<16xf32> to vector<16x1xf32>
    %cst_19 = arith.constant 1.280000e+02 : f32
    %49 = vector.broadcast %cst_19 : f32 to vector<16x1xf32>
    %50 = arith.divf %48, %49 : vector<16x1xf32>
    %cst_20 = arith.constant 9.99999996E-13 : f32
    %51 = vector.broadcast %cst_20 : f32 to vector<16x1xf32>
    %52 = arith.addf %50, %51 : vector<16x1xf32>
    %53 = math.rsqrt %52 : vector<16x1xf32>
    %54 = vector.broadcast %53 : vector<16x1xf32> to vector<16x128xf32>
    %55 = arith.mulf %45, %54 : vector<16x128xf32>
    %c1 = arith.constant 1 : index
    %c0_21 = arith.constant 0 : index
    %56 = vector.load %arg3[%c1, %c0_21] : memref<3x128xf32, #tpu.memory_space<vmem>>, vector<1x128xf32>
    %57 = vector.broadcast %56 : vector<1x128xf32> to vector<16x128xf32>
    %58 = arith.mulf %55, %57 : vector<16x128xf32>
    %c2 = arith.constant 2 : index
    %c0_22 = arith.constant 0 : index
    %59 = vector.load %arg3[%c2, %c0_22] : memref<3x128xf32, #tpu.memory_space<vmem>>, vector<1x128xf32>
    %60 = vector.broadcast %59 : vector<1x128xf32> to vector<16x128xf32>
    %61 = arith.addf %58, %60 : vector<16x128xf32>
    %c0_23 = arith.constant 0 : index
    %c0_24 = arith.constant 0 : index
    %62 = vector.load %arg4[%c0_23, %c0_24] : memref<16x128xf32, #tpu.memory_space<vmem>>, vector<16x128xf32>
    tpu.vector_store %arg4[%c0_23, %c0_24], %61 {strides = array<i32>} : memref<16x128xf32, #tpu.memory_space<vmem>>, vector<16x128xf32>,
    return
  }
  func.func @transform_0(%arg0: i32) -> (i32, i32) {
    %c0_i32 = arith.constant 0 : i32
    %c0_i32_0 = arith.constant 0 : i32
    return %arg0, %c0_i32 : i32, i32
  }
  func.func @transform_1(%arg0: i32) -> (i32, i32) {
    %c0_i32 = arith.constant 0 : i32
    %c0_i32_0 = arith.constant 0 : i32
    %c0_i32_1 = arith.constant 0 : i32
    return %c0_i32, %c0_i32_0 : i32, i32
  }
  func.func @transform_2(%arg0: i32) -> (i32, i32) {
    %c0_i32 = arith.constant 0 : i32
    %c0_i32_0 = arith.constant 0 : i32
    %c0_i32_1 = arith.constant 0 : i32
    return %c0_i32, %c0_i32_0 : i32, i32
  }
  func.func @transform_3(%arg0: i32) -> (i32, i32) {
    %c0_i32 = arith.constant 0 : i32
    %c0_i32_0 = arith.constant 0 : i32
    return %arg0, %c0_i32 : i32, i32
  }
}

</mosaic_0001>

<bundles_post_ra>
// kernel: tpu_custom_call.1
= control target key start
LH: loop header
LB: loop body
LE: loop exit
PB: predicated region body
PF: predicated region fallthrough
CT: control target
= control target key end

     0   :  { %8 = vsyncpa [#allocation3], 0  ;;  %s481_s0 = inlined_call_operand.hbm [shape: f32[16,128], index: 0, kind: input, shape index: {}]   ;;  %s482_s1 = inlined_call_operand.hbm [shape: bf16[128,128], index: 1, kind: input, shape index: {}]   ;;  %s483_s2 = inlined_call_operand.vmem [shape: f32[3,128], index: 2, kind: input, shape index: {}]   ;;  %s484_s3 = inlined_call_operand.hbm [shape: f32[16,128], index: 3, kind: output, shape index: {}]  }
   0x1   :  { %9 = vsyncpa [#allocation6], 0 }
   0x2   :  { %10 = vsyncpa [#allocation4], 0  ;;  %s401_s12 = smov [#allocation2]   ;;  %s329_s16 = scalar_lea.hbm %s481_s0, 256 }
   0x3   :  { %s16_s13 = sshll.u32 %s401_s12, 4  ;;  %p330_p0 = scmp.ne.s32.totalorder %s481_s0, %s329_s16  ;;  %s17_s13 = int_to_ptr.vmem [resolvable:$true] %s16_s13 }
   0x4   :  { %p333_p1 = scmp.lt.u32.totalorder %s329_s16, %s481_s0 }
   0x6   :  { %p335_p2 = pnand %p333_p1, %p330_p0 }
   0x8   :  { %338 = shalt.err (!%p335_p2)
}
   0x9   :  { %s339_s21 = scalar_lea.vmem %s17_s13, 256  ;;  %p344_p4 = scmp.lt.s32.totalorder %s17_s13, %s17_s13 }
   0xa   :  { %p340_p3 = scmp.ne.s32.totalorder %s17_s13, %s339_s21  ;;  %p345_p5 = scmp.lt.s32.totalorder %s339_s21, %s339_s21 }
   0xc   :  { %p346_p6 = por %p345_p5, %p344_p4 }
   0xe   :  { %p347_p7 = pnand %p346_p6, %p340_p3 }
  0x10   :  { %350 = shalt.err (!%p347_p7)
}
  0x11   :  { %s402_s22 = smov 128   ;;  %s403_s23 = smov 8  }
  0x12   :  { %22 = dma.hbm_to_vmem [thread:$0]  %s481_s0, 256, %s17_s13, [#allocation3], %s402_s22, %s402_s22, %s403_s23  }
  0x13   :  { %s404_s26 = smov [#allocation5]   ;;  %s351_s30 = scalar_lea.hbm %s482_s1, 1024 }
  0x14   :  { %s28_s27 = sshll.u32 %s404_s26, 4  ;;  %p352_p8 = scmp.ne.s32.totalorder %s482_s1, %s351_s30  ;;  %s29_s27 = int_to_ptr.vmem [resolvable:$true] %s28_s27 }
  0x15   :  { %p355_p9 = scmp.lt.u32.totalorder %s351_s30, %s482_s1 }
  0x17   :  { %p357_p10 = pnand %p355_p9, %p352_p8 }
  0x19   :  { %360 = shalt.err (!%p357_p10)
}
  0x1a   :  { %s361_s8 = scalar_lea.vmem %s29_s27, 1024  ;;  %p366_p12 = scmp.lt.s32.totalorder %s29_s27, %s29_s27 }
  0x1b   :  { %p362_p11 = scmp.ne.s32.totalorder %s29_s27, %s361_s8  ;;  %p367_p13 = scmp.lt.s32.totalorder %s361_s8, %s361_s8 }
  0x1d   :  { %p368_p0 = por %p367_p13, %p366_p12 }
  0x1f   :  { %p369_p1 = pnand %p368_p0, %p362_p11 }
  0x21   :  { %372 = shalt.err (!%p369_p1)
}
  0x22   :  { %s405_s0 = smov 64   ;;  %s406_s9 = smov 4  }
  0x23   :  { %34 = dma.hbm_to_vmem [thread:$0]  %s482_s1, 1024, %s29_s27, [#allocation6], %s405_s0, %s405_s0, %s406_s9  }
  0x24   :  { %395 = dma.done.wait [#allocation3], 256  }
  0x25   :  { %396 = vsyncadd [#allocation3], 4294967040 }
  0x26   :  { %397 = dma.done.wait [#allocation6], 1024  }
  0x27   :  { %398 = vsyncadd [#allocation6], 4294966272  ;;  %v407_v0 = vmov 0.0   ;;  %vm408_vm0 = vmmov 0   ;;  %v309_v1 = vld [vmem:[#allocation5] sm:$0xff]   ;;  %v310_v2 = vld [vmem:[#allocation5 + $0x8] sm:$0xff]  }
  0x28   :  { %280 = vmatprep.subr.bf16.mxu0 %v407_v0  ;;  %296 = vmatprep.mubr.msk.bf16.mxu0 %vm408_vm0, %v407_v0  ;;  %v311_v3 = vld [vmem:[#allocation5 + $0x10] sm:$0xff]   ;;  %v312_v4 = vld [vmem:[#allocation5 + $0x18] sm:$0xff]   ;;  %v313_v5 = vld [vmem:[#allocation5 + $0x20] sm:$0xff]   ;;  %s409_s17 = smov [#allocation7]  }
  0x29   :  { %281 = vmatpush3.bf16.msra.mxu0 %v309_v1  ;;  %v314_v6 = vld [vmem:[#allocation5 + $0x28] sm:$0xff]   ;;  %v315_v7 = vld [vmem:[#allocation5 + $0x30] sm:$0xff]   ;;  %v316_v8 = vld [vmem:[#allocation5 + $0x38] sm:$0xff]   ;;  %s247_s18 = sshll.u32 %s409_s17, 4  ;;  %s248_s18 = int_to_ptr.vmem [resolvable:$true] %s247_s18 }
  0x2a   :  { %282 = vmatprep.subr.bf16.mxu0 %v407_v0  ;;  %v44_v9 = vld [vmem:[#allocation2] sm:$0xff]  ;;  %v45_v10 = vld [vmem:[#allocation2 + $0x8] sm:$0xff]  ;;  %s373_s19 = scalar_lea.vmem %s248_s18, 256  ;;  %p378_p3 = scmp.lt.s32.totalorder %s248_s18, %s248_s18 }
  0x2b   :  { %v46_v11 = vpack.c.bf16 %v45_v10, %v44_v9  ;;  %v260_v12 = vld [vmem:[%s483_s2] ss:$0 sm:$0xff]  ;;  %p374_p2 = scmp.ne.s32.totalorder %s248_s18, %s373_s19  ;;  %p379_p4 = scmp.lt.s32.totalorder %s373_s19, %s373_s19 }
  0x2d   :  { %283 = vmatpush3.bf16.msra.mxu0 %v310_v2  ;;  %p380_p5 = por %p379_p4, %p378_p3 }
  0x2e   :  { %284 = vmatprep.subr.bf16.mxu0 %v407_v0 }
  0x2f   :  { %p381_p6 = pnand %p380_p5, %p374_p2 }
  0x31   :  { %285 = vmatpush3.bf16.msra.mxu0 %v311_v3 }
  0x32   :  { %286 = vmatprep.subr.bf16.mxu0 %v407_v0 }
  0x35   :  { %287 = vmatpush3.bf16.msra.mxu0 %v312_v4 }
  0x36   :  { %288 = vmatprep.subr.bf16.mxu0 %v407_v0 }
  0x39   :  { %289 = vmatpush3.bf16.msra.mxu0 %v313_v5 }
  0x3a   :  { %290 = vmatprep.subr.bf16.mxu0 %v407_v0 }
  0x3d   :  { %291 = vmatpush3.bf16.msra.mxu0 %v314_v6 }
  0x3e   :  { %292 = vmatprep.subr.bf16.mxu0 %v407_v0 }
  0x41   :  { %293 = vmatpush3.bf16.msra.mxu0 %v315_v7 }
  0x42   :  { %294 = vmatprep.subr.bf16.mxu0 %v407_v0 }
  0x45   :  { %295 = vmatpush3.bf16.msra.mxu0 %v316_v8 }
  0x48   :  { %297 = vmatmul.mubr.bf16.vlgmr.msra.gmra.mrb[0].mxu0 %v46_v11 }
 0x11b   :  { %v150_v13 = vpop.f32.mrb[0].mxu0 }
 0x11c   :  { %v151_v14 = vadd.f32 %v260_v12, %v150_v13  ;;  %v298_v15 = vpop.f32.mrb[1].mxu0 }
 0x11d   :  { %v153_v16 = vpop.f32.mrb[2].mxu0 }
 0x11e   :  { %v157_v17 = vand.u32 2147483647, %v151_v14  ;;  %v154_v18 = vadd.f32 %v260_v12, %v153_v16  ;;  %v299_v19 = vpop.f32.mrb[3].mxu0  ;;  %v269_v16 = vld [vmem:[%s483_s2 + $0x1] ss:$0 sm:$0xff] }
 0x120   :  { %v159_v20 = vmul.f32 0.70710677, %v157_v17  ;;  %v158_v21 = vand.u32 2147483647, %v154_v18 }
 0x122   :  { %v161_v22 = vmul.f32 0.3275911, %v159_v20  ;;  %v160_v23 = vmul.f32 0.70710677, %v158_v21  ;;  %v185_v27 = vsub.f32 0.0, %v159_v20 }
 0x124   :  { %v163_v24 = vadd.f32 1.0, %v161_v22  ;;  %v162_v25 = vmul.f32 0.3275911, %v160_v23  ;;  %v186_v28 = vsub.f32 0.0, %v160_v23  ;;  %v187_v30 = vmul.f32 %v185_v27, %v159_v20 }
 0x126   :  { %317 = vrcp.f32 %v163_v24  ;;  %v164_v26 = vadd.f32 1.0, %v162_v25  ;;  %v188_v33 = vmul.f32 %v186_v28, %v160_v23  ;;  %v189_v35 = vmul.f32 1.442695, %v187_v30 }
 0x128   :  { %319 = vrcp.f32 %v164_v26  ;;  %v191_v39 = vmul.f32 1.442695, %v188_v33 }
 0x129   :  { %321 = vpow2.f32 %v189_v35 }
 0x12a   :  { %323 = vpow2.f32 %v191_v39 }
 0x130   :  { %v318_v29 = vpop.eup %317 }
 0x131   :  { %v167_v31 = vmul.f32 1.0614054, %v318_v29 }
 0x132   :  { %v320_v32 = vpop.eup %319 }
 0x133   :  { %v169_v34 = vadd.f32 -1.4531521, %v167_v31  ;;  %v168_v36 = vmul.f32 1.0614054, %v320_v32  ;;  %v322_v51 = vpop.eup %321 }
 0x134   :  { %v324_v55 = vpop.eup %323 }
 0x135   :  { %v171_v37 = vmul.f32 %v318_v29, %v169_v34  ;;  %v170_v38 = vadd.f32 -1.4531521, %v168_v36 }
 0x137   :  { %v173_v40 = vadd.f32 1.4214138, %v171_v37  ;;  %v172_v41 = vmul.f32 %v320_v32, %v170_v38 }
 0x139   :  { %v175_v42 = vmul.f32 %v318_v29, %v173_v40  ;;  %v174_v43 = vadd.f32 1.4214138, %v172_v41 }
 0x13b   :  { %v177_v44 = vadd.f32 -0.28449672, %v175_v42  ;;  %v176_v45 = vmul.f32 %v320_v32, %v174_v43 }
 0x13d   :  { %v179_v46 = vmul.f32 %v318_v29, %v177_v44  ;;  %v178_v47 = vadd.f32 -0.28449672, %v176_v45 }
 0x13f   :  { %v181_v48 = vadd.f32 0.2548296, %v179_v46  ;;  %v180_v49 = vmul.f32 %v320_v32, %v178_v47 }
 0x141   :  { %v183_v50 = vmul.f32 %v318_v29, %v181_v48  ;;  %v182_v52 = vadd.f32 0.2548296, %v180_v49 }
 0x143   :  { %v193_v53 = vmul.f32 %v322_v51, %v183_v50  ;;  %v184_v54 = vmul.f32 %v320_v32, %v182_v52 }
 0x145   :  { %v195_v56 = vsub.f32 1.0, %v193_v53  ;;  %v194_v57 = vmul.f32 %v324_v55, %v184_v54 }
 0x147   :  { %v197_v58 = vmul.f32 %v195_v56, %v157_v17  ;;  %v196_v59 = vsub.f32 1.0, %v194_v57 }
 0x149   :  { %v199_v60 = vadd.f32 %v197_v58, %v151_v14  ;;  %v198_v61 = vmul.f32 %v196_v59, %v158_v21 }
 0x14b   :  { %v201_v62 = vmul.f32 0.5, %v199_v60  ;;  %v200_v63 = vadd.f32 %v198_v61, %v154_v18  ;;  %v270_v18 = vld [vmem:[%s483_s2 + $0x2] ss:$0 sm:$0xff] }
 0x14d   :  { %203 = vadd.xlane.f32.xlu0 %v201_v62  ;;  %v202_v0 = vmul.f32 0.5, %v200_v63 }
 0x151   :  { %205 = vadd.xlane.f32.xlu0 %v202_v0 }
 0x1da   :  { %v204_v1 = vpop.xlane.xlu0 %203 }
 0x1db   :  { %v208_v2 = vmul.f32 0.0078125, %v204_v1 }
 0x1dd   :  { %v210_v3 = vsub.f32 %v201_v62, %v208_v2 }
 0x1de   :  { %v206_v4 = vpop.xlane.xlu0 %205 }
 0x1df   :  { %v209_v5 = vmul.f32 0.0078125, %v206_v4  ;;  %v212_v6 = vmul.f32 %v210_v3, %v210_v3 }
 0x1e1   :  { %v211_v7 = vsub.f32 %v202_v0, %v209_v5  ;;  %214 = vadd.xlane.f32.xlu1 %v212_v6 }
 0x1e3   :  { %v213_v8 = vmul.f32 %v211_v7, %v211_v7 }
 0x1e5   :  { %216 = vadd.xlane.f32.xlu1 %v213_v8 }
 0x26e   :  { %v215_v9 = vpop.xlane.xlu1 %214 }
 0x26f   :  { %v218_v10 = vmul.f32 0.0078125, %v215_v9 }
 0x271   :  { %v220_v11 = vadd.f32 1e-12, %v218_v10 }
 0x272   :  { %v217_v12 = vpop.xlane.xlu1 %216 }
 0x273   :  { %325 = vrsqrt.f32 %v220_v11  ;;  %v219_v13 = vmul.f32 0.0078125, %v217_v12 }
 0x275   :  { %v221_v14 = vadd.f32 1e-12, %v219_v13 }
 0x277   :  { %327 = vrsqrt.f32 %v221_v14 }
 0x27d   :  { %v326_v15 = vpop.eup %325 }
 0x27e   :  { %v224_v17 = vmul.f32 %v326_v15, %v210_v3 }
 0x280   :  { %v231_v19 = vmul.f32 %v269_v16, %v224_v17 }
 0x281   :  { %v328_v20 = vpop.eup %327 }
 0x282   :  { %v225_v21 = vmul.f32 %v328_v20, %v211_v7  ;;  %v238_v22 = vadd.f32 %v270_v18, %v231_v19 }
 0x284   :  { %v232_v23 = vmul.f32 %v269_v16, %v225_v21  ;;  %240 = vst [vmem:[#allocation7] sm:$0xff] %v238_v22 }
 0x286   :  { %v239_v24 = vadd.f32 %v270_v18, %v232_v23 }
 0x288   :  { %241 = vst [vmem:[#allocation7 + $0x8] sm:$0xff] %v239_v24 }
 0x289   :  { %384 = shalt.err (!%p381_p6)
}
 0x28a   :  { %s385_s21 = scalar_lea.hbm %s484_s3, 256 }
 0x28b   :  { %p386_p7 = scmp.ne.s32.totalorder %s484_s3, %s385_s21  ;;  %p389_p8 = scmp.lt.u32.totalorder %s385_s21, %s484_s3 }
 0x28d   :  { %p391_p9 = pnand %p389_p8, %p386_p7 }
 0x28f   :  { %394 = shalt.err (!%p391_p9)
}
 0x290   :  { %253 = dma.vmem_to_hbm [thread:$0]  %s248_s18, 256, %s484_s3, [#allocation4], %s402_s22, %s402_s22, %s403_s23  }
 0x291   :  { %399 = dma.done.wait [#allocation4], 256  }
 0x292   :  { %400 = vsyncadd [#allocation4], 4294967040 }
 0x293   :  { %257 = vsyncpa [#allocation3], 1 }
 0x294   :  { %258 = vsyncpa [#allocation6], 1 }
 0x295   :  { %259 = vsyncpa [#allocation4], 1 }

</bundles_post_ra>
